<compile_context>
chip_gen: v7x
topology: tpu7x:2x2x1
jax: 0.10.0
libtpu: 0.0.40
codegen_flags: <defaults>
</compile_context>

<pallas_src>
import math

import jax
import jax.numpy as jnp
from jax.experimental import pallas as pl
from jax.experimental.pallas import tpu as pltpu


# ----------------------------------------------------------------------------
# Primary: zero-copy identity via output<->input aliasing, no grid, no DMA.
# ----------------------------------------------------------------------------
def _noop_identity_kernel(x_ref, o_ref):
    # Output HBM buffer IS the (donated / pre-copied) input buffer, so there is
    # nothing to compute or move.  Just pin ordering on the aliased output.
    del x_ref
    if hasattr(pltpu, "touch"):
        pltpu.touch(o_ref)


def _alias_noop_identity(x):
    return pl.pallas_call(
        _noop_identity_kernel,
        out_shape=jax.ShapeDtypeStruct(x.shape, x.dtype),
        in_specs=[pl.BlockSpec(memory_space=pl.ANY)],
        out_specs=pl.BlockSpec(memory_space=pl.ANY),
        input_output_aliases={0: 0},     # output buffer == input buffer
        compiler_params=pltpu.CompilerParams(has_side_effects=True),
        cost_estimate=pl.CostEstimate(flops=0, transcendentals=0,
                                      bytes_accessed=0),
    )(x)


# ----------------------------------------------------------------------------
# Fallback: lane-dense tiled VMEM copy (robust on any toolchain).
# ----------------------------------------------------------------------------
def _identity_copy_kernel(x_ref, o_ref):
    o_ref[...] = x_ref[...]


def _choose_lane_width(total):
    """Largest lane-dense column width (multiple of 128) that divides total."""
    for cand in (16384, 8192, 4096, 2048, 1024, 512, 256, 128):
        if total % cand == 0:
            return cand
    return None


def _tiled_copy_identity(x):
    orig_shape = x.shape
    dtype = x.dtype
    itemsize = jnp.dtype(dtype).itemsize
    total = int(math.prod(orig_shape)) if orig_shape else 1

    C = _choose_lane_width(total)
    if C is None:
        # Not lane-tileable without padding: the op is an identity, so just
        # return x (free and correct) instead of an unbounded (1, total) block.
        return x
    R = total // C
    x2d = x.reshape(R, C)

    # 4 MiB per buffer (in/out double-buffered -> ~16 MiB working set), which
    # fits under the 32 MiB scoped-VMEM limit on all generations.
    target_block_bytes = 4 * 1024 * 1024
    sub = 8 * max(1, 4 // max(1, itemsize))      # packed sublane multiple
    tile_r = max(1, target_block_bytes // (C * itemsize))
    if tile_r >= R:
        tile_r = R                                # single block; no forced split
    else:
        tile_r = max(sub, (tile_r // sub) * sub)

    grid = (pl.cdiv(R, tile_r),)

    out2d = pl.pallas_call(
        _identity_copy_kernel,
        out_shape=jax.ShapeDtypeStruct((R, C), dtype),
        grid=grid,
        in_specs=[pl.BlockSpec((tile_r, C), lambda i: (i, 0))],
        out_specs=pl.BlockSpec((tile_r, C), lambda i: (i, 0)),
        input_output_aliases={0: 0},
        compiler_params=pltpu.CompilerParams(
            dimension_semantics=("parallel",),
            vmem_limit_bytes=32 * 1024 * 1024,
        ),
        cost_estimate=pl.CostEstimate(
            flops=0, transcendentals=0, bytes_accessed=2 * total * itemsize),
    )(x2d)
    return out2d.reshape(orig_shape)


# ----------------------------------------------------------------------------
# Public wrapper matching GNN_Placeholder.forward(x, *args) -> x
# ----------------------------------------------------------------------------
def gnn_placeholder_forward(x, *args):
    """Identity forward; extra args (e.g. edge_index) are accepted and ignored."""
    del args
    try:
        return _alias_noop_identity(x)
    except Exception:
        # Defensive fallback if the no-op/alias path fails to lower.
        return _tiled_copy_identity(x)


if __name__ == "__main__":
    key = jax.random.PRNGKey(0)

    # Small GNN-like node-feature matrix: 8 nodes, 32 features.
    x = jax.random.normal(key, (8, 32), dtype=jnp.float32)
    # Extra args (e.g. edge_index) are accepted and ignored, like the module.
    dummy_edge_index = jnp.zeros((2, 4), dtype=jnp.int32)

    out = gnn_placeholder_forward(x, dummy_edge_index)
    jax.block_until_ready(out)
    assert out.shape == x.shape and out.dtype == x.dtype
    assert bool(jnp.all(out == x))

    # A second shape to re-exercise the call path.
    x2 = jax.random.normal(jax.random.PRNGKey(1), (16, 128), dtype=jnp.float32)
    out2 = gnn_placeholder_forward(x2, dummy_edge_index)
    jax.block_until_ready(out2)
    assert out2.shape == x2.shape and out2.dtype == x2.dtype
    assert bool(jnp.all(out2 == x2))

    print("KERNEL_OK")
</pallas_src>

<mosaic_0001>
module attributes {stable_mosaic.version = 11 : i64} {
  func.func @_noop_identity_kernel(%arg0: memref<8x32xf32, #tpu.memory_space<any>>, %arg1: memref<8x32xf32, #tpu.memory_space<any>>) attributes {dimension_semantics = [], scalar_prefetch = 0 : i64, scratch_operands = 0 : i64, tpu.core_type = #tpu.core_type<tc>} {
    return
  }
}

module attributes {stable_mosaic.version = 11 : i64} {
  func.func @_identity_copy_kernel(%arg0: i32, %arg1: memref<1x256xf32, #tpu.memory_space<vmem>>, %arg2: memref<1x256xf32, #tpu.memory_space<vmem>>) attributes {dimension_semantics = [#tpu.dimension_semantics<parallel>], iteration_bounds = array<i64: 1>, scalar_prefetch = 0 : i64, scratch_operands = 0 : i64, tpu.core_type = #tpu.core_type<tc>, window_params = [{transform_indices = @transform_0, window_bounds = array<i64: 1, 256>}, {transform_indices = @transform_1, window_bounds = array<i64: 1, 256>}]} {
    %c0 = arith.constant 0 : index
    %c0_0 = arith.constant 0 : index
    %0 = vector.load %arg1[%c0, %c0_0] : memref<1x256xf32, #tpu.memory_space<vmem>>, vector<1x256xf32>
    %c0_1 = arith.constant 0 : index
    %c0_2 = arith.constant 0 : index
    %1 = vector.load %arg2[%c0_1, %c0_2] : memref<1x256xf32, #tpu.memory_space<vmem>>, vector<1x256xf32>
    tpu.vector_store %arg2[%c0_1, %c0_2], %0 {strides = array<i32>} : memref<1x256xf32, #tpu.memory_space<vmem>>, vector<1x256xf32>,
    return
  }
  func.func @transform_0(%arg0: i32) -> (i32, i32) {
    %c0_i32 = arith.constant 0 : i32
    %c0_i32_0 = arith.constant 0 : i32
    return %arg0, %c0_i32 : i32, i32
  }
  func.func @transform_1(%arg0: i32) -> (i32, i32) {
    %c0_i32 = arith.constant 0 : i32
    %c0_i32_0 = arith.constant 0 : i32
    return %arg0, %c0_i32 : i32, i32
  }
}

</mosaic_0001>

<bundles_post_ra>
// kernel: tpu_custom_call.1
= control target key start
LH: loop header
LB: loop body
LE: loop exit
PB: predicated region body
PF: predicated region fallthrough
CT: control target
= control target key end

     0   :  { %s16_s0 = inlined_call_operand.hbm [shape: f32[8,32], index: 0, kind: input, shape index: {}, may-alias: {0,1}]   ;;  %s17_s1 = inlined_call_operand.hbm [shape: f32[8,32], index: 1, kind: output, shape index: {}, may-alias: {0,1}]  }

// kernel: tpu_custom_call.1
= control target key start
LH: loop header
LB: loop body
LE: loop exit
PB: predicated region body
PF: predicated region fallthrough
CT: control target
= control target key end

     0   :  { %6 = vsyncpa [#allocation3], 0  ;;  %s128_s0 = inlined_call_operand.hbm [shape: f32[1,256], index: 0, kind: input, shape index: {}, may-alias: {0,1}]   ;;  %s129_s1 = inlined_call_operand.hbm [shape: f32[1,256], index: 1, kind: output, shape index: {}, may-alias: {0,1}]  }
   0x1   :  { %7 = vsyncpa [#allocation4], 0  ;;  %s92_s6 = smov [#allocation2]   ;;  %s44_s10 = scalar_lea.hbm %s128_s0, 32 }
   0x2   :  { %s14_s7 = sshll.u32 %s92_s6, 4  ;;  %p45_p0 = scmp.ne.s32.totalorder %s128_s0, %s44_s10  ;;  %s15_s7 = int_to_ptr.vmem [resolvable:$true] %s14_s7 }
   0x3   :  { %p48_p1 = scmp.lt.u32.totalorder %s44_s10, %s128_s0 }
   0x5   :  { %p50_p2 = pnand %p48_p1, %p45_p0 }
   0x7   :  { %53 = shalt.err (!%p50_p2)
}
   0x8   :  { %s54_s15 = scalar_lea.vmem %s15_s7, 32  ;;  %p59_p4 = scmp.lt.s32.totalorder %s15_s7, %s15_s7 }
   0x9   :  { %p55_p3 = scmp.ne.s32.totalorder %s15_s7, %s54_s15  ;;  %p60_p5 = scmp.lt.s32.totalorder %s54_s15, %s54_s15 }
   0xb   :  { %p61_p6 = por %p60_p5, %p59_p4 }
   0xd   :  { %p62_p7 = pnand %p61_p6, %p55_p3 }
   0xf   :  { %65 = shalt.err (!%p62_p7)
}
  0x10   :  { %17 = dma.hbm_to_vmem [thread:$0]  %s128_s0, 32, %s15_s7, [#allocation3]  }
  0x11   :  { %88 = dma.done.wait [#allocation3], 32  }
  0x12   :  { %89 = vsyncadd [#allocation3], 4294967264  ;;  %v22_v0 = vlaneseq  ;;  %s93_s18 = smov [#allocation5]   ;;  %v21_v1 = vld [vmem:[#allocation2] sm:$0x3] }
  0x13   :  { %s33_s19 = sshll.u32 %s93_s18, 4  ;;  %s34_s19 = int_to_ptr.vmem [resolvable:$true] %s33_s19 }
  0x14   :  { %vm24_vm0 = vcmp.lt.s32.totalorder %v22_v0, 256  ;;  %s66_s20 = scalar_lea.vmem %s34_s19, 32  ;;  %p71_p9 = scmp.lt.s32.totalorder %s34_s19, %s34_s19 }
  0x15   :  { %26 = vst.msk [vmem:[#allocation5] sm:$0x3] %vm24_vm0, %v21_v1  ;;  %p67_p8 = scmp.ne.s32.totalorder %s34_s19, %s66_s20  ;;  %p72_p10 = scmp.lt.s32.totalorder %s66_s20, %s66_s20 }
  0x17   :  { %p73_p11 = por %p72_p10, %p71_p9 }
  0x19   :  { %p74_p12 = pnand %p73_p11, %p67_p8 }
  0x1b   :  { %77 = shalt.err (!%p74_p12)
}
  0x1c   :  { %s78_s0 = scalar_lea.hbm %s129_s1, 32 }
  0x1d   :  { %p79_p13 = scmp.ne.s32.totalorder %s129_s1, %s78_s0  ;;  %p82_p0 = scmp.lt.u32.totalorder %s78_s0, %s129_s1 }
  0x1f   :  { %p84_p1 = pnand %p82_p0, %p79_p13 }
  0x21   :  { %87 = shalt.err (!%p84_p1)
}
  0x22   :  { %36 = dma.vmem_to_hbm [thread:$0]  %s34_s19, 32, %s129_s1, [#allocation4]  }
  0x23   :  { %90 = dma.done.wait [#allocation4], 32  }
  0x24   :  { %91 = vsyncadd [#allocation4], 4294967264 }
  0x25   :  { %40 = vsyncpa [#allocation3], 1 }
  0x26   :  { %41 = vsyncpa [#allocation4], 1 }

</bundles_post_ra>
